<compile_context>
chip_gen: v7x
topology: tpu7x:2x2x1
jax: 0.10.0
libtpu: 0.0.40
codegen_flags: <defaults>
</compile_context>

<pallas_src>
import functools

import jax
import jax.numpy as jnp
from jax.experimental import pallas as pl
from jax.experimental.pallas import tpu as pltpu


def _round_up(n, m):
    return ((n + m - 1) // m) * m


def _critic_kernel(x_ref, w1_ref, b1_ref, w2_ref, b2_ref, w3_ref, b3_ref, out_ref):
    """One batch tile of the fused MLP, in (features, batch) layout.

    x_ref  : (K, TB)     concat(state, action), batch on lanes
    w1_ref : (mid, K)    layer-1 weight (PyTorch (out,in) layout)
    b1_ref : (mid, 1)    layer-1 bias column (f32)
    w2_ref : (mid, mid)
    b2_ref : (mid, 1)
    w3_ref : (mid, 1)    layer-3 weight column
    b3_ref : (1,)        layer-3 bias scalar (SMEM)
    out_ref: (1, TB)     lane-dense output row
    """
    # Layer 1 (fused over the pre-concatenated input): (mid,K) @ (K,TB) -> (mid,TB)
    h1 = jnp.dot(w1_ref[...], x_ref[...], preferred_element_type=jnp.float32)
    h1 = jnp.maximum(h1 + b1_ref[...], 0.0)

    # Layer 2: (mid,mid) @ (mid,TB) -> (mid,TB); matmul operands may be bf16,
    # accumulation and the bias/ReLU epilogue stay f32.
    h2 = jnp.dot(w2_ref[...], h1.astype(w2_ref.dtype),
                 preferred_element_type=jnp.float32)
    h2 = jnp.maximum(h2 + b2_ref[...], 0.0)

    # Layer 3 (mid -> 1): VPU multiply + sublane reduce (XLU) — no N=1 MXU pass,
    # and the result is already the lane-dense (1, TB) output row.
    w3c = w3_ref[...].astype(jnp.float32)             # (mid, 1)
    r = jnp.sum(h2 * w3c, axis=0, keepdims=True)      # (1, TB)
    out_ref[...] = (r + b3_ref[0]).astype(out_ref.dtype)


def prepare_critic_params(w1, b1, w2, b2, w3, b3, matmul_dtype=jnp.float32):
    """One-time packing into the kernel layout (do NOT call per forward step).

    Inputs use the reference layout: weights (in_features, out_features),
    biases 1-D.  The kernel works in (features, batch) layout, so weights are
    stored as (out, in) (== PyTorch nn.Linear.weight) and biases as columns.
    `matmul_dtype=jnp.bfloat16` enables the v6e/v7x MXU fast path.
    """
    return (
        w1.T.astype(matmul_dtype),               # (mid, K)
        b1.reshape(-1, 1).astype(jnp.float32),   # (mid, 1)
        w2.T.astype(matmul_dtype),               # (mid, mid)
        b2.reshape(-1, 1).astype(jnp.float32),   # (mid, 1)
        w3.reshape(-1, 1).astype(matmul_dtype),  # (mid, 1)
        b3.reshape(-1).astype(jnp.float32),      # (1,)  -> SMEM scalar
    )


def critic_forward(state, action, params, *, tb=512):
    """state: (B, state_dim), action: (B, action_dim) -> (B, 1) float32."""
    w1, b1, w2, b2, w3, b3 = params
    assert tb % 128 == 0, "batch tile must be lane-aligned (multiple of 128)"
    B = state.shape[0]
    mid, K = w1.shape

    # Concatenate in the wrapper (avoids in-kernel lane shifts), cast to the
    # matmul storage dtype, and move to (features, batch) so batch is on lanes.
    x = jnp.concatenate([state, action], axis=1).astype(w1.dtype)   # (B, K)
    assert x.shape[1] == K

    tb_eff = min(tb, _round_up(max(B, 1), 128))
    b_pad = _round_up(B, tb_eff)
    if b_pad != B:
        x = jnp.pad(x, ((0, b_pad - B), (0, 0)))
    xt = x.T                                                        # (K, b_pad)
    grid = (b_pad // tb_eff,)

    const = lambda shape: pl.BlockSpec(shape, lambda i: (0, 0))

    out = pl.pallas_call(
        _critic_kernel,
        out_shape=jax.ShapeDtypeStruct((1, b_pad), jnp.float32),
        grid=grid,
        in_specs=[
            # Activations: tiled along the batch (lane) axis, double-buffered.
            pl.BlockSpec((K, tb_eff), lambda i: (0, i)),
            # Weights / biases: constant index_maps -> VMEM-resident across steps.
            const((mid, K)),
            const((mid, 1)),
            const((mid, mid)),
            const((mid, 1)),
            const((mid, 1)),
            # b3 scalar lives in SMEM (no padded VMEM tile / DMA for one value).
            pl.BlockSpec(memory_space=pltpu.MemorySpace.SMEM),
        ],
        out_specs=pl.BlockSpec((1, tb_eff), lambda i: (0, i)),   # lane-dense row
        compiler_params=pltpu.CompilerParams(
            dimension_semantics=("parallel",),   # shard batch tiles across TCs (v7x)
        ),
    )(xt, w1, b1, w2, b2, w3, b3)

    # (1, b_pad) -> (B, 1)
    return out[0, :B].reshape(B, 1)


def init_critic_params(key, mid_dim, state_dim, action_dim):
    """Deterministic init mimicking nn.Linear default (uniform +/- 1/sqrt(fan_in)).

    Returned in the reference layout: weights (in_features, out_features)."""
    in1 = state_dim + action_dim
    k = jax.random.split(key, 6)

    def lin(kw, kb, fan_in, fan_out):
        bound = 1.0 / jnp.sqrt(fan_in)
        w = jax.random.uniform(kw, (fan_in, fan_out), jnp.float32, -bound, bound)
        b = jax.random.uniform(kb, (fan_out,), jnp.float32, -bound, bound)
        return w, b

    w1, b1 = lin(k[0], k[1], in1, mid_dim)
    w2, b2 = lin(k[2], k[3], mid_dim, mid_dim)
    w3, b3 = lin(k[4], k[5], mid_dim, 1)
    return (w1, b1, w2, b2, w3, b3)


def critic_reference(state, action, raw_params):
    w1, b1, w2, b2, w3, b3 = raw_params
    x = jnp.concatenate([state, action], axis=1)
    h1 = jnp.maximum(x @ w1 + b1, 0.0)
    h2 = jnp.maximum(h1 @ w2 + b2, 0.0)
    return h2 @ w3 + b3


if __name__ == "__main__":
    B, state_dim, action_dim, mid_dim = 8, 16, 8, 32

    key = jax.random.PRNGKey(0)
    k_s, k_a, k_p = jax.random.split(key, 3)
    state = jax.random.normal(k_s, (B, state_dim), jnp.float32)
    action = jax.random.normal(k_a, (B, action_dim), jnp.float32)
    raw = init_critic_params(k_p, mid_dim, state_dim, action_dim)
    ref = critic_reference(state, action, raw)

    fwd = jax.jit(functools.partial(critic_forward, tb=512))

    # f32 matmul path (exact vs reference).
    params_f32 = prepare_critic_params(*raw, matmul_dtype=jnp.float32)
    out = jax.block_until_ready(fwd(state, action, params_f32))
    assert out.shape == (B, 1), out.shape
    assert jnp.allclose(out, ref, atol=1e-5, rtol=1e-5), (out, ref)

    # bf16 matmul path (v6e/v7x MXU fast path; f32 accumulate + f32 epilogue).
    params_bf16 = prepare_critic_params(*raw, matmul_dtype=jnp.bfloat16)
    out_bf16 = jax.block_until_ready(fwd(state, action, params_bf16))
    assert out_bf16.shape == (B, 1), out_bf16.shape
    assert jnp.allclose(out_bf16, ref, atol=5e-2, rtol=5e-2), (out_bf16, ref)

    print("KERNEL_OK")
</pallas_src>

<mosaic_0001>
module attributes {stable_mosaic.version = 11 : i64} {
  func.func @_critic_kernel(%arg0: i32, %arg1: memref<24x128xf32, #tpu.memory_space<vmem>>, %arg2: memref<32x24xf32, #tpu.memory_space<vmem>>, %arg3: memref<32x1xf32, #tpu.memory_space<vmem>>, %arg4: memref<32x32xf32, #tpu.memory_space<vmem>>, %arg5: memref<32x1xf32, #tpu.memory_space<vmem>>, %arg6: memref<32x1xf32, #tpu.memory_space<vmem>>, %arg7: memref<1xf32, #tpu.memory_space<smem>>, %arg8: memref<1x128xf32, #tpu.memory_space<vmem>>) attributes {dimension_semantics = [#tpu.dimension_semantics<parallel>], iteration_bounds = array<i64: 1>, scalar_prefetch = 0 : i64, scratch_operands = 0 : i64, tpu.core_type = #tpu.core_type<tc>, window_params = [{transform_indices = @transform_0, window_bounds = array<i64: 24, 128>}, {pipeline_mode = #tpu.pipeline_mode<synchronous>, transform_indices = @transform_1, window_bounds = array<i64: 32, 24>}, {pipeline_mode = #tpu.pipeline_mode<synchronous>, transform_indices = @transform_2, window_bounds = array<i64: 32, 1>}, {pipeline_mode = #tpu.pipeline_mode<synchronous>, transform_indices = @transform_3, window_bounds = array<i64: 32, 32>}, {pipeline_mode = #tpu.pipeline_mode<synchronous>, transform_indices = @transform_4, window_bounds = array<i64: 32, 1>}, {pipeline_mode = #tpu.pipeline_mode<synchronous>, transform_indices = @transform_5, window_bounds = array<i64: 32, 1>}, {transform_indices = @transform_6, window_bounds = array<i64: 1>}, {transform_indices = @transform_7, window_bounds = array<i64: 1, 128>}]} {
    %c0 = arith.constant 0 : index
    %c0_0 = arith.constant 0 : index
    %0 = vector.load %arg2[%c0, %c0_0] : memref<32x24xf32, #tpu.memory_space<vmem>>, vector<32x24xf32>
    %c0_1 = arith.constant 0 : index
    %c0_2 = arith.constant 0 : index
    %1 = vector.load %arg1[%c0_1, %c0_2] : memref<24x128xf32, #tpu.memory_space<vmem>>, vector<24x128xf32>
    %cst = arith.constant dense<0.000000e+00> : vector<32x128xf32>
    %2 = tpu.matmul %0, %1, %cst {dimension_numbers = #tpu.dot_dimension_numbers<[1], [0], [0], [1], [0, 0, 1, 1], [], []>} : vector<32x24xf32>, vector<24x128xf32>, vector<32x128xf32> -> vector<32x128xf32>
    %c0_3 = arith.constant 0 : index
    %c0_4 = arith.constant 0 : index
    %3 = vector.load %arg3[%c0_3, %c0_4] : memref<32x1xf32, #tpu.memory_space<vmem>>, vector<32x1xf32>
    %4 = vector.broadcast %3 : vector<32x1xf32> to vector<32x128xf32>
    %5 = arith.addf %2, %4 : vector<32x128xf32>
    %cst_5 = arith.constant 0.000000e+00 : f32
    %6 = vector.broadcast %cst_5 : f32 to vector<32x128xf32>
    %7 = arith.maximumf %5, %6 : vector<32x128xf32>
    %c0_6 = arith.constant 0 : index
    %c0_7 = arith.constant 0 : index
    %8 = vector.load %arg4[%c0_6, %c0_7] : memref<32x32xf32, #tpu.memory_space<vmem>>, vector<32x32xf32>
    %cst_8 = arith.constant dense<0.000000e+00> : vector<32x128xf32>
    %9 = tpu.matmul %8, %7, %cst_8 {dimension_numbers = #tpu.dot_dimension_numbers<[1], [0], [0], [1], [0, 0, 1, 1], [], []>} : vector<32x32xf32>, vector<32x128xf32>, vector<32x128xf32> -> vector<32x128xf32>
    %c0_9 = arith.constant 0 : index
    %c0_10 = arith.constant 0 : index
    %10 = vector.load %arg5[%c0_9, %c0_10] : memref<32x1xf32, #tpu.memory_space<vmem>>, vector<32x1xf32>
    %11 = vector.broadcast %10 : vector<32x1xf32> to vector<32x128xf32>
    %12 = arith.addf %9, %11 : vector<32x128xf32>
    %cst_11 = arith.constant 0.000000e+00 : f32
    %13 = vector.broadcast %cst_11 : f32 to vector<32x128xf32>
    %14 = arith.maximumf %12, %13 : vector<32x128xf32>
    %c0_12 = arith.constant 0 : index
    %c0_13 = arith.constant 0 : index
    %15 = vector.load %arg6[%c0_12, %c0_13] : memref<32x1xf32, #tpu.memory_space<vmem>>, vector<32x1xf32>
    %16 = vector.broadcast %15 : vector<32x1xf32> to vector<32x128xf32>
    %17 = arith.mulf %14, %16 : vector<32x128xf32>
    %cst_14 = arith.constant dense<0.000000e+00> : vector<128xf32>
    %18 = vector.multi_reduction <add>, %17, %cst_14 [0] : vector<32x128xf32> to vector<128xf32>
    %19 = vector.shape_cast %18 : vector<128xf32> to vector<1x128xf32>
    %c0_15 = arith.constant 0 : index
    %20 = memref.load %arg7[%c0_15] : memref<1xf32, #tpu.memory_space<smem>>
    %21 = vector.broadcast %20 : f32 to vector<1x128xf32>
    %22 = arith.addf %19, %21 : vector<1x128xf32>
    %c0_16 = arith.constant 0 : index
    %c0_17 = arith.constant 0 : index
    %23 = vector.load %arg8[%c0_16, %c0_17] : memref<1x128xf32, #tpu.memory_space<vmem>>, vector<1x128xf32>
    tpu.vector_store %arg8[%c0_16, %c0_17], %22 {strides = array<i32>} : memref<1x128xf32, #tpu.memory_space<vmem>>, vector<1x128xf32>,
    return
  }
  func.func @transform_0(%arg0: i32) -> (i32, i32) {
    %c0_i32 = arith.constant 0 : i32
    %c0_i32_0 = arith.constant 0 : i32
    return %c0_i32, %arg0 : i32, i32
  }
  func.func @transform_1(%arg0: i32) -> (i32, i32) {
    %c0_i32 = arith.constant 0 : i32
    %c0_i32_0 = arith.constant 0 : i32
    %c0_i32_1 = arith.constant 0 : i32
    return %c0_i32, %c0_i32_0 : i32, i32
  }
  func.func @transform_2(%arg0: i32) -> (i32, i32) {
    %c0_i32 = arith.constant 0 : i32
    %c0_i32_0 = arith.constant 0 : i32
    %c0_i32_1 = arith.constant 0 : i32
    return %c0_i32, %c0_i32_0 : i32, i32
  }
  func.func @transform_3(%arg0: i32) -> (i32, i32) {
    %c0_i32 = arith.constant 0 : i32
    %c0_i32_0 = arith.constant 0 : i32
    %c0_i32_1 = arith.constant 0 : i32
    return %c0_i32, %c0_i32_0 : i32, i32
  }
  func.func @transform_4(%arg0: i32) -> (i32, i32) {
    %c0_i32 = arith.constant 0 : i32
    %c0_i32_0 = arith.constant 0 : i32
    %c0_i32_1 = arith.constant 0 : i32
    return %c0_i32, %c0_i32_0 : i32, i32
  }
  func.func @transform_5(%arg0: i32) -> (i32, i32) {
    %c0_i32 = arith.constant 0 : i32
    %c0_i32_0 = arith.constant 0 : i32
    %c0_i32_1 = arith.constant 0 : i32
    return %c0_i32, %c0_i32_0 : i32, i32
  }
  func.func @transform_6(%arg0: i32) -> i32 {
    %c0_i32 = arith.constant 0 : i32
    %c0_i32_0 = arith.constant 0 : i32
    return %c0_i32 : i32
  }
  func.func @transform_7(%arg0: i32) -> (i32, i32) {
    %c0_i32 = arith.constant 0 : i32
    %c0_i32_0 = arith.constant 0 : i32
    return %c0_i32, %arg0 : i32, i32
  }
}

</mosaic_0001>

<bundles_post_ra>
// kernel: critic_forward.1
= control target key start
LH: loop header
LB: loop body
LE: loop exit
PB: predicated region body
PF: predicated region fallthrough
CT: control target
= control target key end

     0   :  { %vm58_vm0 = vcmask 195584   ;;  %v399_v2 = vmov 0   ;;  %vm188_vm1 = vcmask 261120   ;;  %s523_s0 = inlined_call_operand.vmem [shape: f32[24,128], index: 0, kind: input, shape index: {}]   ;;  %s524_s1 = inlined_call_operand.vmem [shape: f32[32,24], index: 1, kind: input, shape index: {}]   ;;  %s525_s2 = inlined_call_operand.vmem [shape: f32[32,1], index: 2, kind: input, shape index: {}]   ;;  %s526_s4 = inlined_call_operand.vmem [shape: f32[32,1], index: 4, kind: input, shape index: {}]   ;;  %s527_s5 = inlined_call_operand.vmem [shape: f32[32,1], index: 5, kind: input, shape index: {}]   ;;  %s528_s3 = inlined_call_operand.vmem [shape: f32[32,32], index: 3, kind: input, shape index: {}]   ;;  %s529_s6 = inlined_call_operand.<no memory space> [shape: f32[1], index: 6, kind: input, shape index: {}]   ;;  %s530_s7 = inlined_call_operand.vmem [shape: f32[1,128], index: 7, kind: output, shape index: {}]  }
   0x1   :  { %v31_v0 = vld [vmem:[%s523_s0] sm:$0xff]  ;;  %v32_v1 = vld [vmem:[%s523_s0 + $0x8] sm:$0xff]  ;;  %397 = vset.pattern.permute.xlu0 %v399_v2  ;;  %398 = vset.pattern.permute.xlu1 %v399_v2  ;;  %v33_v5 = vld [vmem:[%s523_s0 + $0x10] sm:$0xff] }
   0x2   :  { %v384_v3 = vpack.c.bf16 %v32_v1, %v31_v0  ;;  %v27_v4 = vld [vmem:[%s524_s1] sm:$0xff]  ;;  %v36_v7 = vld [vmem:[%s525_s2 + $0x10] sm:$0xff]  ;;  %v35_v8 = vld [vmem:[%s525_s2 + $0x8] sm:$0xff] }
   0x3   :  { %364 = vmatprep.mubr.msk.f32.mxu0 %vm58_vm0, %v27_v4  ;;  %v34_v6 = vld [vmem:[%s525_s2] sm:$0xff]  ;;  %50 = vperm.xlu1 %398, %v36_v7   ;;  %v37_v9 = vld [vmem:[%s525_s2 + $0x18] sm:$0xff]  ;;  %v28_v10 = vld [vmem:[%s524_s1 + $0x8] sm:$0xff] }
   0x4   :  { %385 = vmatprep.subr.bf16.mxu0 %v384_v3  ;;  %40 = vperm.xlu0 %397, %v34_v6   ;;  %v29_v11 = vld [vmem:[%s524_s1 + $0x10] sm:$0xff]  ;;  %v164_v12 = vld [vmem:[%s526_s4] sm:$0xff]  ;;  %v165_v13 = vld [vmem:[%s526_s4 + $0x8] sm:$0xff] }
   0x5   :  { %387 = vmatpush3.bf16.msra.mxu0 %v384_v3  ;;  %v30_v14 = vld [vmem:[%s524_s1 + $0x18] sm:$0xff]  ;;  %v166_v15 = vld [vmem:[%s526_s4 + $0x10] sm:$0xff]  ;;  %v290_v17 = vld [vmem:[%s527_s5] sm:$0xff] }
   0x6   :  { %362 = vmatprep.subr.mxu0 %v33_v5  ;;  %v167_v16 = vld [vmem:[%s526_s4 + $0x18] sm:$0xff]  ;;  %v291_v18 = vld [vmem:[%s527_s5 + $0x8] sm:$0xff]  ;;  %v292_v19 = vld [vmem:[%s527_s5 + $0x10] sm:$0xff] }
   0x7   :  { %55 = vperm.xlu1 %398, %v37_v9   ;;  %v293_v20 = vld [vmem:[%s527_s5 + $0x18] sm:$0xff]  ;;  %v160_v21 = vld [vmem:[%s528_s3] sm:$0xff]  ;;  %v161_v40 = vld [vmem:[%s528_s3 + $0x8] sm:$0xff] }
   0x8   :  { %45 = vperm.xlu0 %397, %v35_v8   ;;  %378 = vmatprep.mubr.msk.f32.mxu1 %vm188_vm1, %v160_v21  ;;  %v162_v41 = vld [vmem:[%s528_s3 + $0x10] sm:$0xff]  ;;  %v163_v42 = vld [vmem:[%s528_s3 + $0x18] sm:$0xff] }
   0x9   :  { %363 = vmatpush3.msra.mxu0 %v33_v5 }
   0xa   :  { %365 = vmatmul.mubr.msk.f32.vlgmr.msra.gmra.mrb[0].mxu0 %vm58_vm0, %v28_v10 }
   0xb   :  { %367 = vmatprep.mubr.msk.f32.mxu0 %vm58_vm0, %v29_v11  ;;  %175 = vperm.xlu1 %398, %v165_v13   ;;  %v328_v11 = vstv %s529_s6 }
   0xc   :  { %170 = vperm.xlu0 %397, %v164_v12  }
   0xe   :  { %368 = vmatmul.mubr.msk.f32.gmra.mrb[2].mxu0 %vm58_vm0, %v30_v14 }
   0xf   :  { %185 = vperm.xlu1 %398, %v167_v16  }
  0x10   :  { %180 = vperm.xlu0 %397, %v166_v15  }
  0x13   :  { %301 = vperm.xlu1 %398, %v291_v18  }
  0x14   :  { %296 = vperm.xlu0 %397, %v290_v17  }
  0x17   :  { %311 = vperm.xlu1 %398, %v293_v20  }
  0x18   :  { %306 = vperm.xlu0 %397, %v292_v19  }
  0x82   :  { %v51_v23 = vpop.permute.xlu1 %50 }
  0x83   :  { %v41_v22 = vpop.permute.xlu0 %40 }
  0x86   :  { %v56_v30 = vpop.permute.xlu1 %55 }
  0x87   :  { %v46_v24 = vpop.permute.xlu0 %45 }
  0x8a   :  { %v176_v44 = vpop.permute.xlu1 %175 }
  0x8b   :  { %v171_v43 = vpop.permute.xlu0 %170 }
  0x8e   :  { %v186_v46 = vpop.permute.xlu1 %185 }
  0x8f   :  { %v181_v45 = vpop.permute.xlu0 %180 }
  0x92   :  { %v302_v53 = vpop.permute.xlu1 %301 }
  0x93   :  { %v297_v51 = vpop.permute.xlu0 %296 }
  0x96   :  { %v312_v2 = vpop.permute.xlu1 %311 }
  0x97   :  { %v307_v0 = vpop.permute.xlu0 %306 }
  0xdd   :  { %v366_v25 = vpop.f32.mrb[0].mxu0 }
  0xde   :  { %v143_v26 = vadd.f32 %v366_v25, %v46_v24  ;;  %v137_v27 = vpop.f32.mrb[1].mxu0 }
  0xdf   :  { %v138_v28 = vadd.f32 %v137_v27, %v41_v22 }
  0xe0   :  { %v157_v29 = vmax.f32 %v143_v26, 0.0 }
  0xe1   :  { %v156_v31 = vmax.f32 %v138_v28, 0.0  ;;  %v369_v32 = vpop.f32.mrb[2].mxu0 }
  0xe2   :  { %v153_v33 = vadd.f32 %v369_v32, %v56_v30  ;;  %v147_v34 = vpop.f32.mrb[3].mxu0 }
  0xe3   :  { %v148_v35 = vadd.f32 %v147_v34, %v51_v23  ;;  %v388_v36 = vpack.c.bf16 %v157_v29, %v156_v31 }
  0xe4   :  { %v159_v37 = vmax.f32 %v153_v33, 0.0 }
  0xe5   :  { %v158_v38 = vmax.f32 %v148_v35, 0.0  ;;  %389 = vmatprep.subr.bf16.mxu1 %v388_v36 }
  0xe6   :  { %391 = vmatpush3.bf16.msra.mxu1 %v388_v36 }
  0xe7   :  { %v392_v39 = vpack.c.bf16 %v159_v37, %v158_v38 }
  0xe9   :  { %393 = vmatprep.subr.bf16.mxu1 %v392_v39 }
  0xea   :  { %395 = vmatpush3.bf16.msra.mxu1 %v392_v39 }
  0xed   :  { %379 = vmatmul.mubr.msk.f32.vlgmr.msra.gmra.mrb[0].mxu1 %vm188_vm1, %v161_v40 }
  0xee   :  { %381 = vmatprep.mubr.msk.f32.mxu1 %vm188_vm1, %v162_v41 }
  0xf1   :  { %382 = vmatmul.mubr.msk.f32.gmra.mrb[2].mxu1 %vm188_vm1, %v163_v42 }
 0x1c0   :  { %v380_v47 = vpop.f32.mrb[0].mxu1 }
 0x1c1   :  { %v273_v48 = vadd.f32 %v380_v47, %v176_v44  ;;  %v267_v49 = vpop.f32.mrb[1].mxu1 }
 0x1c2   :  { %v268_v50 = vadd.f32 %v267_v49, %v171_v43 }
 0x1c3   :  { %v287_v52 = vmax.f32 %v273_v48, 0.0 }
 0x1c4   :  { %v286_v54 = vmax.f32 %v268_v50, 0.0  ;;  %v383_v55 = vpop.f32.mrb[2].mxu1 }
 0x1c5   :  { %v315_v56 = vmul.f32 %v302_v53, %v287_v52  ;;  %v283_v57 = vadd.f32 %v383_v55, %v186_v46  ;;  %v277_v58 = vpop.f32.mrb[3].mxu1 }
 0x1c6   :  { %v314_v59 = vmul.f32 %v297_v51, %v286_v54  ;;  %v278_v60 = vadd.f32 %v277_v58, %v181_v45 }
 0x1c7   :  { %v289_v62 = vmax.f32 %v283_v57, 0.0 }
 0x1c8   :  { %v318_v61 = vadd.f32 %v315_v56, %v314_v59  ;;  %v288_v63 = vmax.f32 %v278_v60, 0.0 }
 0x1c9   :  { %v317_v3 = vmul.f32 %v312_v2, %v289_v62 }
 0x1ca   :  { %v316_v1 = vmul.f32 %v307_v0, %v288_v63 }
 0x1cc   :  { %v319_v4 = vadd.f32 %v318_v61, %v316_v1 }
 0x1ce   :  { %v320_v5 = vadd.f32 %v319_v4, %v317_v3 }
 0x1d0   :  { %v321_v6 = vrot.slane %v320_v5, 4 }
 0x1d2   :  { %v322_v7 = vadd.f32 %v321_v6, %v320_v5 }
 0x1d4   :  { %v323_v8 = vrot.slane %v322_v7, 2 }
 0x1d6   :  { %v324_v9 = vadd.f32 %v323_v8, %v322_v7 }
 0x1d8   :  { %v325_v10 = vrot.slane %v324_v9, 1 }
 0x1da   :  { %v326_v12 = vadd.f32 %v325_v10, %v324_v9 }
 0x1dc   :  { %v329_v13 = vadd.f32 %v328_v11, %v326_v12 }
 0x1de   :  { %330 = vst [vmem:[%s530_s7] sm:$0x1] %v329_v13 }

</bundles_post_ra>
